<compile_context>
chip_gen: v5e
topology: v5e:2x2
jax: 0.10.0
libtpu: 0.0.40
codegen_flags: <defaults>
</compile_context>

<pallas_src>
import functools

import jax
import jax.numpy as jnp
from jax.experimental import pallas as pl
from jax.experimental.pallas import tpu as pltpu


def mlp_embedder_kernel(x_ref, w_in_ref, b_in_ref, w_out_ref, b_out_ref, o_ref):
    """out = silu(x @ w_in + b_in) @ w_out + b_out   on one (TB, in_dim) row tile."""
    x = x_ref[...]                                                    # (TB, in_dim)

    # ---- in_layer + SiLU ----
    h = jnp.dot(x, w_in_ref[...], preferred_element_type=jnp.float32) + b_in_ref[...]
    h = h * jax.nn.sigmoid(h)          # SiLU; sigmoid lowers to the EUP slot (free next to MXU)

    # ---- out_layer ----
    h = h.astype(w_out_ref.dtype)      # keep MXU inputs in the weight dtype (bf16-friendly)
    out = jnp.dot(h, w_out_ref[...], preferred_element_type=jnp.float32) + b_out_ref[...]

    o_ref[...] = out.astype(o_ref.dtype)


def _pick_row_tile(B: int, cap: int = 512) -> int:
    """Largest batch-row tile that divides B, is a multiple of 8, and <= cap.
    Falls back to the full batch (always a legal block) if B is not 8-aligned."""
    if B % 8 != 0:
        return B
    tb = min(B, cap)
    tb -= tb % 8
    while B % tb != 0:
        tb -= 8
    return tb


def mlp_embedder(x, w_in, b_in, w_out, b_out, *, row_tile=None):
    """
    Pallas TPU forward of MLPEmbedder.

    x:     (B, in_dim)
    w_in:  (in_dim, hidden)   -- transposed vs. torch in_layer.weight
    b_in:  (1, hidden)
    w_out: (hidden, hidden)   -- transposed vs. torch out_layer.weight
    b_out: (1, hidden)
    returns (B, hidden)
    """
    B, in_dim = x.shape
    hidden = w_in.shape[1]
    tb = row_tile if row_tile is not None else _pick_row_tile(B)
    assert B % tb == 0, "row tile must divide batch"

    in_specs = [
        pl.BlockSpec((tb, in_dim), lambda i: (i, 0)),        # x row tile (pipelined)
        pl.BlockSpec((in_dim, hidden), lambda i: (0, 0)),    # w_in: constant index -> resident
        pl.BlockSpec((1, hidden), lambda i: (0, 0)),         # b_in
        pl.BlockSpec((hidden, hidden), lambda i: (0, 0)),    # w_out: resident
        pl.BlockSpec((1, hidden), lambda i: (0, 0)),         # b_out
    ]
    out_spec = pl.BlockSpec((tb, hidden), lambda i: (i, 0))

    return pl.pallas_call(
        mlp_embedder_kernel,
        out_shape=jax.ShapeDtypeStruct((B, hidden), x.dtype),
        grid_spec=pltpu.PrefetchScalarGridSpec(
            num_scalar_prefetch=0,
            grid=(B // tb,),
            in_specs=in_specs,
            out_specs=out_spec,
        ),
        compiler_params=pltpu.CompilerParams(
            # Independent row tiles -> shard across v7x's two TensorCores.
            dimension_semantics=("parallel",),
        ),
    )(x, w_in, b_in, w_out, b_out)


def mlp_embedder_reference(x, w_in, b_in, w_out, b_out):
    """Pure-JAX reference mirroring the PyTorch module semantics."""
    h = x @ w_in + b_in
    h = h * jax.nn.sigmoid(h)
    return h @ w_out + b_out


if __name__ == "__main__":
    # Small shapes consistent with the module's forward signature: x is (B, in_dim).
    B = 16
    IN_DIM = 32
    HIDDEN = 64

    key = jax.random.PRNGKey(0)
    k_x, k_win, k_bin, k_wout, k_bout = jax.random.split(key, 5)

    x = jax.random.normal(k_x, (B, IN_DIM), jnp.float32)
    w_in = 0.1 * jax.random.normal(k_win, (IN_DIM, HIDDEN), jnp.float32)
    b_in = 0.1 * jax.random.normal(k_bin, (1, HIDDEN), jnp.float32)
    w_out = 0.1 * jax.random.normal(k_wout, (HIDDEN, HIDDEN), jnp.float32)
    b_out = 0.1 * jax.random.normal(k_bout, (1, HIDDEN), jnp.float32)

    out = mlp_embedder(x, w_in, b_in, w_out, b_out)
    out = jax.block_until_ready(out)

    ref = mlp_embedder_reference(x, w_in, b_in, w_out, b_out)
    assert out.shape == (B, HIDDEN)
    max_err = float(jnp.max(jnp.abs(out - ref)))
    assert jnp.allclose(out, ref, atol=2e-2, rtol=2e-2), max_err

    print("KERNEL_OK")
</pallas_src>

<mosaic_0001>
module attributes {stable_mosaic.version = 11 : i64} {
  func.func @mlp_embedder_kernel(%arg0: i32, %arg1: memref<16x32xf32, #tpu.memory_space<vmem>>, %arg2: memref<32x64xf32, #tpu.memory_space<vmem>>, %arg3: memref<1x64xf32, #tpu.memory_space<vmem>>, %arg4: memref<64x64xf32, #tpu.memory_space<vmem>>, %arg5: memref<1x64xf32, #tpu.memory_space<vmem>>, %arg6: memref<16x64xf32, #tpu.memory_space<vmem>>) attributes {dimension_semantics = [#tpu.dimension_semantics<parallel>], iteration_bounds = array<i64: 1>, scalar_prefetch = 0 : i64, scratch_operands = 0 : i64, tpu.core_type = #tpu.core_type<tc>, window_params = [{transform_indices = @transform_0, window_bounds = array<i64: 16, 32>}, {pipeline_mode = #tpu.pipeline_mode<synchronous>, transform_indices = @transform_1, window_bounds = array<i64: 32, 64>}, {pipeline_mode = #tpu.pipeline_mode<synchronous>, transform_indices = @transform_2, window_bounds = array<i64: 1, 64>}, {pipeline_mode = #tpu.pipeline_mode<synchronous>, transform_indices = @transform_3, window_bounds = array<i64: 64, 64>}, {pipeline_mode = #tpu.pipeline_mode<synchronous>, transform_indices = @transform_4, window_bounds = array<i64: 1, 64>}, {transform_indices = @transform_5, window_bounds = array<i64: 16, 64>}]} {
    %c0 = arith.constant 0 : index
    %c0_0 = arith.constant 0 : index
    %0 = vector.load %arg1[%c0, %c0_0] : memref<16x32xf32, #tpu.memory_space<vmem>>, vector<16x32xf32>
    %c0_1 = arith.constant 0 : index
    %c0_2 = arith.constant 0 : index
    %1 = vector.load %arg2[%c0_1, %c0_2] : memref<32x64xf32, #tpu.memory_space<vmem>>, vector<32x64xf32>
    %cst = arith.constant dense<0.000000e+00> : vector<16x64xf32>
    %2 = tpu.matmul %0, %1, %cst {dimension_numbers = #tpu.dot_dimension_numbers<[1], [0], [0], [1], [0, 0, 1, 1], [], []>} : vector<16x32xf32>, vector<32x64xf32>, vector<16x64xf32> -> vector<16x64xf32>
    %c0_3 = arith.constant 0 : index
    %c0_4 = arith.constant 0 : index
    %3 = vector.load %arg3[%c0_3, %c0_4] : memref<1x64xf32, #tpu.memory_space<vmem>>, vector<1x64xf32>
    %4 = vector.broadcast %3 : vector<1x64xf32> to vector<16x64xf32>
    %5 = arith.addf %2, %4 : vector<16x64xf32>
    %6 = arith.negf %5 : vector<16x64xf32>
    %7 = math.exp %6 : vector<16x64xf32>
    %cst_5 = arith.constant 1.000000e+00 : f32
    %8 = vector.broadcast %cst_5 : f32 to vector<16x64xf32>
    %9 = arith.addf %8, %7 : vector<16x64xf32>
    %10 = arith.divf %8, %9 : vector<16x64xf32>
    %11 = arith.mulf %5, %10 : vector<16x64xf32>
    %c0_6 = arith.constant 0 : index
    %c0_7 = arith.constant 0 : index
    %12 = vector.load %arg4[%c0_6, %c0_7] : memref<64x64xf32, #tpu.memory_space<vmem>>, vector<64x64xf32>
    %cst_8 = arith.constant dense<0.000000e+00> : vector<16x64xf32>
    %13 = tpu.matmul %11, %12, %cst_8 {dimension_numbers = #tpu.dot_dimension_numbers<[1], [0], [0], [1], [0, 0, 1, 1], [], []>} : vector<16x64xf32>, vector<64x64xf32>, vector<16x64xf32> -> vector<16x64xf32>
    %c0_9 = arith.constant 0 : index
    %c0_10 = arith.constant 0 : index
    %14 = vector.load %arg5[%c0_9, %c0_10] : memref<1x64xf32, #tpu.memory_space<vmem>>, vector<1x64xf32>
    %15 = vector.broadcast %14 : vector<1x64xf32> to vector<16x64xf32>
    %16 = arith.addf %13, %15 : vector<16x64xf32>
    %c0_11 = arith.constant 0 : index
    %c0_12 = arith.constant 0 : index
    %17 = vector.load %arg6[%c0_11, %c0_12] : memref<16x64xf32, #tpu.memory_space<vmem>>, vector<16x64xf32>
    tpu.vector_store %arg6[%c0_11, %c0_12], %16 {strides = array<i32>} : memref<16x64xf32, #tpu.memory_space<vmem>>, vector<16x64xf32>,
    return
  }
  func.func @transform_0(%arg0: i32) -> (i32, i32) {
    %c0_i32 = arith.constant 0 : i32
    %c0_i32_0 = arith.constant 0 : i32
    return %arg0, %c0_i32 : i32, i32
  }
  func.func @transform_1(%arg0: i32) -> (i32, i32) {
    %c0_i32 = arith.constant 0 : i32
    %c0_i32_0 = arith.constant 0 : i32
    %c0_i32_1 = arith.constant 0 : i32
    return %c0_i32, %c0_i32_0 : i32, i32
  }
  func.func @transform_2(%arg0: i32) -> (i32, i32) {
    %c0_i32 = arith.constant 0 : i32
    %c0_i32_0 = arith.constant 0 : i32
    %c0_i32_1 = arith.constant 0 : i32
    return %c0_i32, %c0_i32_0 : i32, i32
  }
  func.func @transform_3(%arg0: i32) -> (i32, i32) {
    %c0_i32 = arith.constant 0 : i32
    %c0_i32_0 = arith.constant 0 : i32
    %c0_i32_1 = arith.constant 0 : i32
    return %c0_i32, %c0_i32_0 : i32, i32
  }
  func.func @transform_4(%arg0: i32) -> (i32, i32) {
    %c0_i32 = arith.constant 0 : i32
    %c0_i32_0 = arith.constant 0 : i32
    %c0_i32_1 = arith.constant 0 : i32
    return %c0_i32, %c0_i32_0 : i32, i32
  }
  func.func @transform_5(%arg0: i32) -> (i32, i32) {
    %c0_i32 = arith.constant 0 : i32
    %c0_i32_0 = arith.constant 0 : i32
    return %arg0, %c0_i32 : i32, i32
  }
}

</mosaic_0001>

<bundles_post_ra>
// kernel: tpu_custom_call.1
= control target key start
LH: loop header
LB: loop body
LE: loop exit
PB: predicated region body
PF: predicated region fallthrough
CT: control target
= control target key end

     0   :  { %10 = vsyncpa [#allocation3], 0  ;;  %s418_s0 = inlined_call_operand.hbm [shape: f32[16,32], index: 0, kind: input, shape index: {}]   ;;  %s419_s1 = inlined_call_operand.hbm [shape: f32[32,64], index: 1, kind: input, shape index: {}]   ;;  %s420_s2 = inlined_call_operand.vmem [shape: f32[1,64], index: 2, kind: input, shape index: {}]   ;;  %s421_s3 = inlined_call_operand.hbm [shape: f32[64,64], index: 3, kind: input, shape index: {}]   ;;  %s422_s4 = inlined_call_operand.vmem [shape: f32[1,64], index: 4, kind: input, shape index: {}]   ;;  %s423_s5 = inlined_call_operand.hbm [shape: f32[16,64], index: 5, kind: output, shape index: {}]  }
   0x1   :  { %11 = vsyncpa [#allocation6], 0 }
   0x2   :  { %12 = vsyncpa [#allocation4], 0  ;;  %s30_s20 = sshll.u32 %s419_s1, 4  ;;  %s348_s21 = smov [#allocation5]   ;;  %s31_s20 = int_to_ptr.hbm [resolvable:$true] %s30_s20 }
   0x3   :  { %s32_s22 = sshll.u32 %s348_s21, 4  ;;  %s17_s25 = sshll.u32 %s418_s0, 4  ;;  %s33_s22 = int_to_ptr.vmem [resolvable:$true] %s32_s22  ;;  %s18_s25 = int_to_ptr.hbm [resolvable:$true] %s17_s25 }
   0x4   :  { %s349_s26 = smov 128   ;;  %s350_s27 = smov 8  }
   0x5   :  { %38 = dma.hbm_to_vmem [thread:$0]  %s31_s20, 512, %s33_s22, [#allocation6], %s349_s26, %s349_s26, %s350_s27  }
   0x6   :  { %s351_s28 = smov [#allocation2]   ;;  %s45_s1 = sshll.u32 %s421_s3, 4  ;;  %s46_s1 = int_to_ptr.hbm [resolvable:$true] %s45_s1 }
   0x7   :  { %s19_s29 = sshll.u32 %s351_s28, 4  ;;  %s352_s0 = smov [#allocation7]   ;;  %s20_s29 = int_to_ptr.vmem [resolvable:$true] %s19_s29 }
   0x8   :  { %25 = dma.hbm_to_vmem [thread:$0]  %s18_s25, 256, %s20_s29, [#allocation3], %s349_s26, %s349_s26, %s350_s27  }
   0x9   :  { %s47_s7 = sshll.u32 %s352_s0, 4  ;;  %s48_s7 = int_to_ptr.vmem [resolvable:$true] %s47_s7 }
   0xa   :  { %53 = dma.hbm_to_vmem [thread:$0]  %s46_s1, 1024, %s48_s7, [#allocation6], %s349_s26, %s349_s26, %s350_s27  }
   0xb   :  { %342 = dma.done.wait [#allocation3], 256  }
   0xc   :  { %343 = vsyncadd [#allocation3], 4294967040 }
   0xd   :  { %344 = dma.done.wait [#allocation6], 1536  }
   0xe   :  { %345 = vsyncadd [#allocation6], 4294965760  ;;  %v73_v0 = vld [vmem:[#allocation5 + $0x18] sm:$0xff]  ;;  %v72_v1 = vld [vmem:[#allocation5 + $0x10] sm:$0xff]  ;;  %vm78_vm0 = vcmask 261120   ;;  %vm160_vm5 = vcmask 523264  }
   0xf   :  { %97 = vmatpush.msra.mxu0 %v73_v0  ;;  %218 = vmatpush.msra.mxu3 %v73_v0  ;;  %v71_v2 = vld [vmem:[#allocation5 + $0x8] sm:$0xff]  ;;  %v70_v3 = vld [vmem:[#allocation5] sm:$0xff]  ;;  %v68_v4 = vld [vmem:[#allocation2] sm:$0xff]  ;;  %s353_s10 = smov [#allocation8]   ;;  %s198_s14 = sshll.u32 %s423_s5, 4  ;;  %s199_s14 = int_to_ptr.hbm [resolvable:$true] %s198_s14 }
  0x10   :  { %v69_v5 = vld [vmem:[#allocation2 + $0x8] sm:$0xff]  ;;  %v154_v7 = vld [vmem:[#allocation7 + $0x30] sm:$0xff]  ;;  %v153_v8 = vld [vmem:[#allocation7 + $0x28] sm:$0xff]  ;;  %s196_s11 = sshll.u32 %s353_s10, 4  ;;  %s197_s11 = int_to_ptr.vmem [resolvable:$true] %s196_s11 }
  0x11   :  { %98 = vmatpush.msra.mxu0 %v72_v1  ;;  %219 = vmatpush.msra.mxu3 %v72_v1  ;;  %v155_v6 = vld [vmem:[#allocation7 + $0x38] sm:$0xff]  ;;  %v152_v9 = vld [vmem:[#allocation7 + $0x20] sm:$0xff]  ;;  %v150_v11 = vld [vmem:[#allocation7 + $0x10] sm:$0xff] }
  0x12   :  { %175 = vmatpush.msra.mxu1 %v155_v6  ;;  %222 = vmatpush.msra.mxu2 %v155_v6  ;;  %v151_v10 = vld [vmem:[#allocation7 + $0x18] sm:$0xff]  ;;  %v236_v12 = vld [vmem:[%s420_s2] ss:$0 sm:$0xff]  ;;  %v149_v13 = vld [vmem:[#allocation7 + $0x8] sm:$0xff] }
  0x13   :  { %99 = vmatpush.msra.mxu0 %v71_v2  ;;  %220 = vmatpush.msra.mxu3 %v71_v2  ;;  %v148_v14 = vld [vmem:[#allocation7] sm:$0xff]  ;;  %v237_v47 = vld [vmem:[%s422_s4] ss:$0 sm:$0xff] }
  0x14   :  { %176 = vmatpush.msra.mxu1 %v154_v7  ;;  %223 = vmatpush.msra.mxu2 %v154_v7 }
  0x15   :  { %100 = vmatpush.msra.mxu0 %v70_v3  ;;  %221 = vmatpush.msra.mxu3 %v70_v3 }
  0x16   :  { %212 = vmatmul.msk.f32.vlgmr.msra.gmra.mxu0 %vm78_vm0, %v68_v4  ;;  %213 = vmatmul.msk.f32.vlgmr.msra.gmra.mxu3 %vm78_vm0, %v69_v5 }
  0x17   :  { %177 = vmatpush.msra.mxu1 %v153_v8  ;;  %224 = vmatpush.msra.mxu2 %v153_v8 }
  0x19   :  { %178 = vmatpush.msra.mxu1 %v152_v9  ;;  %225 = vmatpush.msra.mxu2 %v152_v9 }
  0x1b   :  { %179 = vmatpush.msra.mxu1 %v151_v10  ;;  %226 = vmatpush.msra.mxu2 %v151_v10 }
  0x1d   :  { %180 = vmatpush.msra.mxu1 %v150_v11  ;;  %227 = vmatpush.msra.mxu2 %v150_v11 }
  0x1f   :  { %181 = vmatpush.msra.mxu1 %v149_v13  ;;  %228 = vmatpush.msra.mxu2 %v149_v13 }
  0x21   :  { %182 = vmatpush.msra.mxu1 %v148_v14  ;;  %229 = vmatpush.msra.mxu2 %v148_v14 }
  0x93   :  { %v102_v15 = vpop.f32.mrf.mxu0 }
  0x94   :  { %v103_v16 = vadd.f32 %v236_v12, %v102_v15 }
  0x96   :  { %v214_v17 = vmul.f32 -1.442695, %v103_v16 }
  0x98   :  { %238 = vpow2.f32 %v214_v17 }
  0x99   :  { %v105_v18 = vpop.f32.mrf.mxu3 }
  0x9a   :  { %v106_v19 = vadd.f32 %v236_v12, %v105_v18 }
  0x9c   :  { %v215_v20 = vmul.f32 -1.442695, %v106_v19 }
  0x9e   :  { %v239_v21 = vpop.eup %238  ;;  %240 = vpow2.f32 %v215_v20 }
  0x9f   :  { %v114_v22 = vadd.f32 1.0, %v239_v21 }
  0xa1   :  { %242 = vrcp.f32 %v114_v22  ;;  %v127_v27 = vand.u32 2147483648, %v114_v22  ;;  %vm121_vm1 = vweird.f32 %v114_v22  ;;  %v125_v29 = vand.u32 2147483647, %v114_v22 }
  0xa3   :  { %v128_v32 = vor.u32 1.1754944e-38, %v127_v27  ;;  %vm126_vm4 = vcmp.eq.f32.partialorder %v125_v29, 8.507059e+37 }
  0xa4   :  { %v241_v23 = vpop.eup %240 }
  0xa5   :  { %v115_v24 = vadd.f32 1.0, %v241_v23 }
  0xa7   :  { %v243_v25 = vpop.eup %242  ;;  %244 = vrcp.f32 %v115_v24  ;;  %v142_v38 = vand.u32 2147483648, %v115_v24  ;;  %v140_v41 = vand.u32 2147483647, %v115_v24  ;;  %vm136_vm7 = vweird.f32 %v115_v24 }
  0xa8   :  { %v117_v26 = vmul.f32 %v243_v25, %v114_v22  ;;  %vm122_vm2 = vweird.f32 %v243_v25 }
  0xa9   :  { %vm123_vm3 = vmor %vm121_vm1, %vm122_vm2  ;;  %v143_v43 = vor.u32 1.1754944e-38, %v142_v38  ;;  %vm141_vm9 = vcmp.eq.f32.partialorder %v140_v41, 8.507059e+37 }
  0xaa   :  { %v118_v28 = vsub.f32 1.0, %v117_v26 }
  0xac   :  { %v119_v30 = vmul.f32 %v243_v25, %v118_v28 }
  0xad   :  { %v245_v31 = vpop.eup %244 }
  0xae   :  { %v120_v33 = vadd.f32 %v243_v25, %v119_v30  ;;  %v132_v34 = vmul.f32 %v245_v31, %v115_v24  ;;  %vm137_vm6 = vweird.f32 %v245_v31 }
  0xaf   :  { %vm138_vm8 = vmor %vm136_vm7, %vm137_vm6 }
  0xb0   :  { %v124_v35 = vsel %vm123_vm3, %v243_v25, %v120_v33  ;;  %v133_v36 = vsub.f32 1.0, %v132_v34 }
  0xb1   :  { %v129_v37 = vsel %vm126_vm4, %v128_v32, %v124_v35 }
  0xb2   :  { %v146_v39 = vmul.f32 %v129_v37, %v103_v16  ;;  %v134_v40 = vmul.f32 %v245_v31, %v133_v36 }
  0xb4   :  { %v135_v42 = vadd.f32 %v245_v31, %v134_v40  ;;  %216 = vmatmul.msk.f32.vlgmr.msra.gmra.mxu1 %vm160_vm5, %v146_v39 }
  0xb6   :  { %v139_v44 = vsel %vm138_vm8, %v245_v31, %v135_v42 }
  0xb7   :  { %v144_v45 = vsel %vm141_vm9, %v143_v43, %v139_v44 }
  0xb8   :  { %v147_v46 = vmul.f32 %v144_v45, %v106_v19 }
  0xba   :  { %217 = vmatmul.msk.f32.vlgmr.msra.gmra.mxu2 %vm160_vm5, %v147_v46 }
 0x131   :  { %v184_v48 = vpop.f32.mrf.mxu1 }
 0x132   :  { %v185_v49 = vadd.f32 %v237_v47, %v184_v48 }
 0x134   :  { %190 = vst.msk [vmem:[#allocation8] sm:$0xff] %vm160_vm5, %v185_v49 }
 0x13d   :  { %v187_v50 = vpop.f32.mrf.mxu2 }
 0x13e   :  { %v188_v51 = vadd.f32 %v237_v47, %v187_v50 }
 0x140   :  { %191 = vst.msk [vmem:[#allocation8 + $0x8] sm:$0xff] %vm160_vm5, %v188_v51 }
 0x141   :  { %204 = dma.vmem_to_hbm [thread:$0]  %s197_s11, 256, %s199_s14, [#allocation4], %s349_s26, %s349_s26, %s350_s27  }
 0x142   :  { %346 = dma.done.wait [#allocation4], 256  }
 0x143   :  { %347 = vsyncadd [#allocation4], 4294967040 }
 0x144   :  { %209 = vsyncpa [#allocation3], 1 }
 0x145   :  { %210 = vsyncpa [#allocation6], 1 }
 0x146   :  { %211 = vsyncpa [#allocation4], 1 }

</bundles_post_ra>
